<compile_context>
chip_gen: v6e
topology: v6e:2x2x1
jax: 0.10.0
libtpu: 0.0.40
codegen_flags: <defaults>
</compile_context>

<pallas_src>
import jax
import jax.numpy as jnp
from jax import lax
from jax.experimental import pallas as pl
from jax.experimental.pallas import tpu as pltpu


def _round_up(x, m):
    return ((x + m - 1) // m) * m


def _fused_conv_kernel(x_ref, w_ref, b_ref, o_ref):
    """One grid step: (TM, K) @ (K, TCO) + bias, K = 9*Cin (fused 1x1 ∘ 3x3/s2).

    x_ref : (1, TM, K)    bf16  im2col rows for one image / M tile
    w_ref : (K, TCO)      bf16  fused conv weights, one Cout tile
    b_ref : (1, TCO)      f32   bias of the strided conv
    o_ref : (1, TM, TCO)  f32
    """
    acc = jnp.dot(x_ref[0], w_ref[...], preferred_element_type=jnp.float32)
    o_ref[0] = (acc + b_ref[...]).astype(o_ref.dtype)


def downsample_forward(x_nchw, params, *, downsample_position="after",
                       tile_m=256, tile_cout=256, compute_dtype=jnp.bfloat16):
    """x_nchw: (N, Cin, H, W) float32, exactly as the PyTorch module receives it."""
    if downsample_position != "after":
        raise NotImplementedError("only downsample_position='after' is implemented")

    N, Cin, H, W = x_nchw.shape
    conv_w = params["conv_w"]            # (Cout, Cin)        1x1 conv, no bias
    pool_w = params["pool_w"]            # (Cout, Cout, 3, 3) stride-2 "pool" conv
    pool_b = params["pool_b"]            # (Cout,)
    Cout = pool_w.shape[0]

    Ho = (H - 1) // 2 + 1                # Conv2d(k=3, s=2, p=1) output size
    Wo = (W - 1) // 2 + 1
    M = Ho * Wo
    K = 9 * Cin

    # Fold the 1x1 conv into the 3x3 conv (exact algebra, done in f32, then cast):
    # the (N, Cout, H, W) intermediate never touches HBM.
    w_eff = jnp.einsum("omhw,mi->hwio", pool_w, conv_w).reshape(K, Cout)

    # im2col in the wrapper: pad by 1 (valid since conv#1 has no bias, so the
    # conv of the zero padding is zero) and take the 9 stride-2 tap windows as
    # contiguous slabs concatenated along the channel axis.  Tap order
    # [kh, kw, cin] matches the w_eff reshape above.
    x = jnp.transpose(x_nchw, (0, 2, 3, 1))                  # NHWC, channels on lanes
    xpad = jnp.pad(x, ((0, 0), (1, 1), (1, 1), (0, 0)))
    taps = []
    for kh in range(3):
        for kw in range(3):
            taps.append(lax.slice(
                xpad, (0, kh, kw, 0),
                (N, kh + 2 * Ho - 1, kw + 2 * Wo - 1, Cin),
                (1, 2, 2, 1)))                               # (N, Ho, Wo, Cin)
    x_col = jnp.concatenate(taps, axis=-1).reshape(N, M, K)

    # Tile sizes / padding so every block satisfies the (8,128) rule.
    tm = min(tile_m, _round_up(M, 8))
    m_pad = _round_up(M, tm)
    if Cout <= tile_cout:
        tco, cout_pad = Cout, Cout                           # full-extent block
    else:
        assert tile_cout % 128 == 0, "Cout tile must be a multiple of 128"
        tco = tile_cout
        cout_pad = _round_up(Cout, tco)

    x_col = jnp.pad(x_col, ((0, 0), (0, m_pad - M), (0, 0))).astype(compute_dtype)
    w_pad = jnp.pad(w_eff, ((0, 0), (0, cout_pad - Cout))).astype(compute_dtype)
    bias = jnp.pad(pool_b, (0, cout_pad - Cout)).reshape(1, cout_pad).astype(jnp.float32)

    grid = (N, m_pad // tm, cout_pad // tco)

    out = pl.pallas_call(
        _fused_conv_kernel,
        out_shape=jax.ShapeDtypeStruct((N, m_pad, cout_pad), jnp.float32),
        grid_spec=pltpu.PrefetchScalarGridSpec(
            num_scalar_prefetch=0,
            grid=grid,
            in_specs=[
                pl.BlockSpec((1, tm, K), lambda n, m, c: (n, m, 0)),
                pl.BlockSpec((K, tco), lambda n, m, c: (0, c)),
                pl.BlockSpec((1, tco), lambda n, m, c: (0, c)),
            ],
            out_specs=pl.BlockSpec((1, tm, tco), lambda n, m, c: (n, m, c)),
        ),
        compiler_params=pltpu.CompilerParams(
            dimension_semantics=("parallel", "parallel", "parallel"),
            vmem_limit_bytes=64 * 1024 * 1024,
        ),
    )(x_col, w_pad, bias)

    out = out[:, :M, :Cout].reshape(N, Ho, Wo, Cout)
    # NCHW to match the PyTorch module's output; drop this transpose (and the
    # input one) if the surrounding network is kept channels-last.
    return jnp.transpose(out, (0, 3, 1, 2))


def downsample_reference(x_nchw, params):
    """Pure-JAX f32 reference mirroring the PyTorch forward (two unfused convs)."""
    hi = jax.lax.Precision.HIGHEST
    z = jnp.einsum("nihw,oi->nohw", x_nchw, params["conv_w"], precision=hi)
    out = lax.conv_general_dilated(
        z, params["pool_w"], window_strides=(2, 2), padding=((1, 1), (1, 1)),
        dimension_numbers=("NCHW", "OIHW", "NCHW"), precision=hi)
    return out + params["pool_b"][None, :, None, None]


if __name__ == "__main__":
    def make_case(key, n, cin, cout, h, w):
        k1, k2, k3, k4 = jax.random.split(key, 4)
        params = {
            # Conv2d(in, out, 1x1, bias=False): weight (Cout, Cin, 1, 1) -> (Cout, Cin)
            "conv_w": jax.random.normal(k1, (cout, cin), jnp.float32) * 0.1,
            # Conv2d(out, out, 3x3, stride=2, padding=1, bias=True)
            "pool_w": jax.random.normal(k2, (cout, cout, 3, 3), jnp.float32) * 0.1,
            "pool_b": jax.random.normal(k3, (cout,), jnp.float32) * 0.1,
        }
        x = jax.random.normal(k4, (n, cin, h, w), jnp.float32)
        return x, params

    key = jax.random.PRNGKey(0)
    k_a, k_b = jax.random.split(key)

    # Case 1: even spatial size.
    x, params = make_case(k_a, 2, 16, 32, 16, 16)
    out = jax.block_until_ready(downsample_forward(x, params))
    ref = downsample_reference(x, params)
    assert out.shape == ref.shape == (2, 32, 8, 8), out.shape
    err = float(jnp.abs(out - ref).max())
    assert err < 5e-2, err   # bf16 operands vs f32 HIGHEST reference

    # Case 2: odd spatial sizes (exercises stride-2 tap padding edge cases).
    x, params = make_case(k_b, 1, 8, 16, 15, 13)
    out = jax.block_until_ready(downsample_forward(x, params))
    ref = downsample_reference(x, params)
    assert out.shape == ref.shape == (1, 16, 8, 7), out.shape
    err = float(jnp.abs(out - ref).max())
    assert err < 5e-2, err

    print("KERNEL_OK")
</pallas_src>

<mosaic_0001>
module attributes {stable_mosaic.version = 11 : i64} {
  func.func @_fused_conv_kernel(%arg0: i32, %arg1: i32, %arg2: i32, %arg3: memref<1x64x144xbf16, #tpu.memory_space<vmem>>, %arg4: memref<144x32xbf16, #tpu.memory_space<vmem>>, %arg5: memref<1x32xf32, #tpu.memory_space<vmem>>, %arg6: memref<1x64x32xf32, #tpu.memory_space<vmem>>) attributes {dimension_semantics = [#tpu.dimension_semantics<parallel>, #tpu.dimension_semantics<parallel>, #tpu.dimension_semantics<parallel>], iteration_bounds = array<i64: 2, 1, 1>, scalar_prefetch = 0 : i64, scratch_operands = 0 : i64, tpu.core_type = #tpu.core_type<tc>, window_params = [{transform_indices = @transform_0, window_bounds = array<i64: 1, 64, 144>}, {transform_indices = @transform_1, window_bounds = array<i64: 144, 32>}, {transform_indices = @transform_2, window_bounds = array<i64: 1, 32>}, {transform_indices = @transform_3, window_bounds = array<i64: 1, 64, 32>}]} {
    %c0 = arith.constant 0 : index
    %c0_0 = arith.constant 0 : index
    %c0_1 = arith.constant 0 : index
    %0 = vector.load %arg3[%c0, %c0_0, %c0_1] : memref<1x64x144xbf16, #tpu.memory_space<vmem>>, vector<1x64x144xbf16>
    %1 = vector.shape_cast %0 : vector<1x64x144xbf16> to vector<64x144xbf16>
    %c0_2 = arith.constant 0 : index
    %c0_3 = arith.constant 0 : index
    %2 = vector.load %arg4[%c0_2, %c0_3] : memref<144x32xbf16, #tpu.memory_space<vmem>>, vector<144x32xbf16>
    %cst = arith.constant dense<0.000000e+00> : vector<64x32xf32>
    %3 = tpu.matmul %1, %2, %cst {dimension_numbers = #tpu.dot_dimension_numbers<[1], [0], [0], [1], [0, 0, 1, 1], [], []>} : vector<64x144xbf16>, vector<144x32xbf16>, vector<64x32xf32> -> vector<64x32xf32>
    %c0_4 = arith.constant 0 : index
    %c0_5 = arith.constant 0 : index
    %4 = vector.load %arg5[%c0_4, %c0_5] : memref<1x32xf32, #tpu.memory_space<vmem>>, vector<1x32xf32>
    %5 = vector.broadcast %4 : vector<1x32xf32> to vector<64x32xf32>
    %6 = arith.addf %3, %5 : vector<64x32xf32>
    %c0_6 = arith.constant 0 : index
    %c0_7 = arith.constant 0 : index
    %c0_8 = arith.constant 0 : index
    %7 = vector.load %arg6[%c0_6, %c0_7, %c0_8] : memref<1x64x32xf32, #tpu.memory_space<vmem>>, vector<1x64x32xf32>
    %8 = vector.shape_cast %7 : vector<1x64x32xf32> to vector<64x32xf32>
    %9 = vector.shape_cast %6 : vector<64x32xf32> to vector<1x64x32xf32>
    tpu.vector_store %arg6[%c0_6, %c0_7, %c0_8], %9 {strides = array<i32>} : memref<1x64x32xf32, #tpu.memory_space<vmem>>, vector<1x64x32xf32>,
    return
  }
  func.func @transform_0(%arg0: i32, %arg1: i32, %arg2: i32) -> (i32, i32, i32) {
    %c0_i32 = arith.constant 0 : i32
    %c0_i32_0 = arith.constant 0 : i32
    return %arg0, %arg1, %c0_i32 : i32, i32, i32
  }
  func.func @transform_1(%arg0: i32, %arg1: i32, %arg2: i32) -> (i32, i32) {
    %c0_i32 = arith.constant 0 : i32
    %c0_i32_0 = arith.constant 0 : i32
    return %c0_i32, %arg2 : i32, i32
  }
  func.func @transform_2(%arg0: i32, %arg1: i32, %arg2: i32) -> (i32, i32) {
    %c0_i32 = arith.constant 0 : i32
    %c0_i32_0 = arith.constant 0 : i32
    return %c0_i32, %arg2 : i32, i32
  }
  func.func @transform_3(%arg0: i32, %arg1: i32, %arg2: i32) -> (i32, i32, i32) {
    %c0_i32 = arith.constant 0 : i32
    return %arg0, %arg1, %arg2 : i32, i32, i32
  }
}

</mosaic_0001>

<bundles_post_ra>
// kernel: tpu_custom_call.1
= control target key start
LH: loop header
LB: loop body
LE: loop exit
PB: predicated region body
PF: predicated region fallthrough
CT: control target
= control target key end

     0   :  { %8 = vsyncpa [#allocation3], 0  ;;  %s1010_s0 = inlined_call_operand.hbm [shape: bf16[2,64,144], index: 0, kind: input, shape index: {}]   ;;  %s1011_s1 = inlined_call_operand.vmem [shape: bf16[144,32], index: 1, kind: input, shape index: {}]   ;;  %s1012_s2 = inlined_call_operand.vmem [shape: f32[1,32], index: 2, kind: input, shape index: {}]   ;;  %s1013_s3 = inlined_call_operand.vmem [shape: f32[2,64,32], index: 3, kind: output, shape index: {}]  }
   0x1   :  { %10 = vsyncpa [#allocation3 + $0x1], 0  ;;  %s852_s12 = smov 0   ;;  %s854_s13 = smov 0  }
   0x2   :  { %s856_s14 = smov 0   ;;  %s858_s15 = smov 0  }
   0x3   :  { %s860_s16 = smov 0   ;;  %s862_s17 = smov 0  }
   0x4 LB: > { %s612_s18 = sadd.s32 4294967295, %s826_s17   ;;  %s35_s19 = sadd.s32 1, %s822_s16  ;;  %s826_s17 = sphi %s862_s17, %s16_s17   ;;  %s822_s16 = sphi %s860_s16, %s1021_s16   ;;  %s818_s15 = sphi %s858_s15, %s1020_s15   ;;  %s814_s14 = sphi %s856_s14, %s1019_s14   ;;  %s810_s13 = sphi %s854_s13, %s1018_s13   ;;  %s806_s12 = sphi %s852_s12, %s1017_s12  }
   0x5   : > { %p37_p0 = scmp.ge.s32.totalorder %s35_s19, 2  ;;  %s44_s20 = sadd.s32 1, %s814_s14 }
   0x6   : > { %p51_p1 = scmp.ne.s32.totalorder %s814_s14, %s810_s13  ;;  %p52_p2 = scmp.eq.s32.totalorder %s826_s17, 0 }
   0x7   : > { %s1023_s19 = smov (%p37_p0, %s35_s19), 0  ;;  %p57_p4 = scmp.ne.s32.totalorder %s810_s13, %s806_s12 }
   0x8   : > { %p888_p3 = por %p52_p2, %p51_p1  ;;  %s39_s22 = ssub.s32 %s822_s16, %s1023_s19 }
   0x9   : > { %p58_p5 = scmp.eq.s32.totalorder %s612_s18, 0  ;;  %p42_p6 = scmp.eq.s32.totalorder %s39_s22, 0 }
   0xa   : > { %p675_p8 = scmp.lt.s32.totalorder %s826_s17, 2  ;;  %s176_s25 = sand.u32 1, %s814_s14  }
   0xb   : > { %p895_p7 = por %p58_p5, %p57_p4  ;;  %s649_s26 = sshll.u32 %s822_s16, 10 }
   0xc   : > { %s901_s24 = scalar_select %p42_p6, %s814_s14, %s44_s20  }
   0xd   : > { %s618_s27 = sshll.u32 %s176_s25, 6  ;;  %s189_s30 = scalar_lea.hbm %s1010_s0, %s649_s26 }
   0xe   : > { %s180_s4 = scalar_lea.vmem [#allocation2], %s618_s27  ;;  %p910_p9 = pnand %p675_p8, %p888_p3 }
   0xf   : > { %s190_s5 = sshll.u32 %s180_s4, 4  ;;  %s177_s7 = scalar_lea.sflag [#allocation3], %s176_s25  ;;  %s191_s5 = int_to_ptr.vmem [resolvable:$true] %s190_s5 }
  0x10   : > { %p750_p10 = pneg %p910_p9  ;;  %s761_s8 = scalar_lea.vmem %s191_s5, 1024 }
  0x11   : > { %p762_p11 = scmp.ne.s32.totalorder %s191_s5, %s761_s8  ;;  %s828_s9 = smov [#allocation2]  }
  0x12   : > { %s766_s10 = sshll.u32 %s828_s9, 4  ;;  %s767_s10 = int_to_ptr.vmem [resolvable:$false] %s766_s10 }
  0x13   : > { %p764_p12 = pnand %p762_p11, %p750_p10  ;;  %s768_s11 = scalar_lea.vmem %s767_s10, 2048 }
  0x14   : > { %p769_p0 = scmp.lt.s32.totalorder %s191_s5, %s767_s10  ;;  %p770_p1 = scmp.lt.s32.totalorder %s768_s11, %s761_s8 }
  0x15   : > { %p765_p13 = pneg %p764_p12 }
  0x16   : > { %p771_p2 = por %p770_p1, %p769_p0 }
  0x18   : > { %p772_p3 = pnand %p771_p2, %p765_p13 }
  0x1a   : > { %775 = shalt.err (!%p772_p3)
}
  0x1b   : > { %s829_s12 = smov 128   ;;  %s830_s18 = smov 8  }
  0x1c   : > { %674 = dma.hbm_to_vmem [thread:$0]  (!%p910_p9), %s189_s30, 1024, %s191_s5, %s177_s7, %s829_s12, %s829_s12, %s830_s18  }
  0x1d   : > { %p621_p4 = scmp.ge.s32.totalorder %s826_s17, 1  ;;  %p198_p5 = scmp.lt.s32.totalorder %s826_s17, 3 }
  0x1f   : > { %p199_p6 = pnand %p621_p4, %p198_p5 }
  0x20   : > { %s204_s20 = sand.u32 (!%p199_p6), 1, %s810_s13  }
  0x21   : > { %202 = sbr.rel (%p199_p6) target bundleno = 284 (0x11c), region = 32  ;;  %s622_s21 = sshll.u32 (!%p199_p6), %s204_s20, 6 }
  0x22   : > { %s205_s22 = scalar_lea.sflag (!%p199_p6), [#allocation3], %s204_s20  ;;  %s921_s25 = scalar_lea.vmem (!%p199_p6), [#allocation2], %s622_s21 }
  0x26   : > { %801 = dma.done.wait (%p895_p7), %s205_s22, 1024  }
  0x27   : > { %803 = vsyncadd (%p895_p7), %s205_s22, 4294966272  ;;  %v831_v0 = vmov 0   ;;  %v727_v1 = vld [vmem:[%s1011_s1 + $0x38] sm:$0xff]   ;;  %v728_v2 = vld [vmem:[%s1011_s1 + $0x30] sm:$0xff]   ;;  %vm390_vm0 = vcmask 130048   ;;  %p254_p7 = scmp.lt.s32.totalorder %s818_s15, 1 }
  0x28   : > { %403 = vmatprep.subr.bf16.mxu0 %v831_v0  ;;  %651 = vmatprep.subr.bf16.mxu1 %v831_v0  ;;  %v729_v3 = vld [vmem:[%s1011_s1 + $0x28] sm:$0xff]   ;;  %v730_v4 = vld [vmem:[%s1011_s1 + $0x20] sm:$0xff]   ;;  %v731_v7 = vld [vmem:[%s1011_s1 + $0x18] sm:$0xff]   ;;  %vm468_vm1 = vcmask 261120  }
  0x29   : > { %404 = vmatpush1.bf16.msra.mxu0 %v727_v1  ;;  %660 = vmatpush1.bf16.msra.mxu1 %v727_v1  ;;  %v738_v5 = vld [vmem:[%s921_s25 + $0x4] ss:$8 sps:$4 sm:$0xff]   ;;  %v732_v8 = vld [vmem:[%s1011_s1 + $0x10] sm:$0xff]   ;;  %v736_v12 = vld [vmem:[%s921_s25] ss:$8 sps:$4 sm:$0xff]   ;;  %s1025_s15 = smov (!%p254_p7, %s818_s15), 1 }
  0x2a   : > { %405 = vmatprep.subr.bf16.mxu0 %v831_v0  ;;  %652 = vmatprep.subr.bf16.mxu1 %v831_v0  ;;  %v741_v6 = vld [vmem:[%s921_s25 + $0x24] ss:$8 sps:$4 sm:$0xff]   ;;  %v739_v13 = vld [vmem:[%s921_s25 + $0x20] ss:$8 sps:$4 sm:$0xff]   ;;  %v742_v14 = vld [vmem:[%s921_s25 + $0x14] ss:$8 sps:$4 sm:$0xff]  }
  0x2b   : > { %643 = vmatprep.mubr.msk.bf16.mxu0 %vm390_vm0, %v738_v5  ;;  %645 = vmatprep.mubr.msk.bf16.mxu1 %vm390_vm0, %v741_v6  ;;  %v733_v9 = vld [vmem:[%s1011_s1 + $0x8] sm:$0xff]   ;;  %v734_v10 = vld [vmem:[%s1011_s1] sm:$0xff]   ;;  %v744_v15 = vld [vmem:[%s921_s25 + $0x34] ss:$8 sps:$4 sm:$0xff]   ;;  %s650_s22 = sshll.u32 %s1025_s15, 6 }
  0x2c   : > { %v735_v11 = vld [vmem:[%s1011_s1 + $0x40] sm:$0xff]   ;;  %v746_v16 = vld [vmem:[%s921_s25 + $0x10] ss:$8 sps:$4 sm:$0xff]   ;;  %s974_s23 = scalar_lea.vmem %s1013_s3, %s650_s22 }
  0x2d   : > { %406 = vmatpush1.bf16.msra.mxu0 %v728_v2  ;;  %661 = vmatpush1.bf16.msra.mxu1 %v728_v2  ;;  %v747_v17 = vld [vmem:[%s921_s25 + $0x30] ss:$8 sps:$4 sm:$0xff]   ;;  %v625_v18 = vld [vmem:[%s1012_s2] ss:$0 sm:$0xff] }
  0x2e   : > { %407 = vmatprep.subr.bf16.mxu0 %v831_v0  ;;  %653 = vmatprep.subr.bf16.mxu1 %v831_v0 }
  0x31   : > { %408 = vmatpush1.bf16.msra.mxu0 %v729_v3  ;;  %662 = vmatpush1.bf16.msra.mxu1 %v729_v3 }
  0x32   : > { %409 = vmatprep.subr.bf16.mxu0 %v831_v0  ;;  %654 = vmatprep.subr.bf16.mxu1 %v831_v0 }
  0x35   : > { %410 = vmatpush1.bf16.msra.mxu0 %v730_v4  ;;  %663 = vmatpush1.bf16.msra.mxu1 %v730_v4 }
  0x36   : > { %411 = vmatprep.subr.bf16.mxu0 %v831_v0  ;;  %655 = vmatprep.subr.bf16.mxu1 %v831_v0 }
  0x39   : > { %412 = vmatpush1.bf16.msra.mxu0 %v731_v7  ;;  %664 = vmatpush1.bf16.msra.mxu1 %v731_v7 }
  0x3a   : > { %413 = vmatprep.subr.bf16.mxu0 %v831_v0  ;;  %656 = vmatprep.subr.bf16.mxu1 %v831_v0 }
  0x3d   : > { %414 = vmatpush1.bf16.msra.mxu0 %v732_v8  ;;  %665 = vmatpush1.bf16.msra.mxu1 %v732_v8 }
  0x3e   : > { %415 = vmatprep.subr.bf16.mxu0 %v831_v0  ;;  %657 = vmatprep.subr.bf16.mxu1 %v831_v0 }
  0x41   : > { %416 = vmatpush1.bf16.msra.mxu0 %v733_v9  ;;  %666 = vmatpush1.bf16.msra.mxu1 %v733_v9 }
  0x42   : > { %417 = vmatprep.subr.bf16.mxu0 %v831_v0  ;;  %658 = vmatprep.subr.bf16.mxu1 %v831_v0 }
  0x45   : > { %418 = vmatpush1.bf16.msra.mxu0 %v734_v10  ;;  %667 = vmatpush1.bf16.msra.mxu1 %v734_v10 }
  0x46   : > { %433 = vmatprep.subr.bf16.mxu0 %v831_v0  ;;  %659 = vmatprep.subr.bf16.mxu1 %v831_v0 }
  0x49   : > { %434 = vmatpush2.bf16.msra.mxu0 %v735_v11  ;;  %668 = vmatpush2.bf16.msra.mxu1 %v735_v11 }
  0x4c   : > { %436 = vmatmul.mubr.bf16.vlgmr.msra.gmra.mxu0 %v736_v12  ;;  %452 = vmatmul.mubr.bf16.vlgmr.msra.gmra.mxu1 %v739_v13 }
  0x4d   : > { %644 = vmatprep.mubr.msk.bf16.mxu0 %vm390_vm0, %v742_v14  ;;  %646 = vmatprep.mubr.msk.bf16.mxu1 %vm390_vm0, %v744_v15 }
  0x54   : > { %444 = vmatmul.mubr.bf16.gmra.mxu0 %v746_v16  ;;  %460 = vmatmul.mubr.bf16.gmra.mxu1 %v747_v17 }
 0x10c   : > { %v437_v19 = vpop.f32.mrf.mxu0  ;;  %v453_v20 = vpop.f32.mrf.mxu1 }
 0x10d   : > { %v438_v21 = vadd.f32 %v625_v18, %v437_v19  ;;  %v454_v22 = vadd.f32 %v625_v18, %v453_v20 }
 0x10e   : > { %v439_v23 = vpop.f32.mrf.mxu0  ;;  %v455_v24 = vpop.f32.mrf.mxu1 }
 0x10f   : > { %469 = vst.msk [vmem:[%s974_s23] sm:$0xff] %vm468_vm1, %v438_v21  ;;  %473 = vst.msk [vmem:[%s974_s23 + $0x20] sm:$0xff] %vm468_vm1, %v454_v22 }
 0x110   : > { %v440_v25 = vpop.f32.mrf.mxu0  ;;  %v456_v26 = vpop.f32.mrf.mxu1 }
 0x111   : > { %v441_v27 = vadd.f32 %v625_v18, %v440_v25  ;;  %v457_v28 = vadd.f32 %v625_v18, %v456_v26 }
 0x112   : > { %v442_v29 = vpop.f32.mrf.mxu0  ;;  %v458_v30 = vpop.f32.mrf.mxu1 }
 0x113   : > { %470 = vst.msk [vmem:[%s974_s23 + $0x8] sm:$0xff] %vm468_vm1, %v441_v27  ;;  %474 = vst.msk [vmem:[%s974_s23 + $0x28] sm:$0xff] %vm468_vm1, %v457_v28 }
 0x114   : > { %v445_v31 = vpop.f32.mrf.mxu0  ;;  %v461_v32 = vpop.f32.mrf.mxu1 }
 0x115   : > { %v446_v33 = vadd.f32 %v625_v18, %v445_v31  ;;  %v462_v34 = vadd.f32 %v625_v18, %v461_v32 }
 0x116   : > { %v447_v35 = vpop.f32.mrf.mxu0  ;;  %v463_v36 = vpop.f32.mrf.mxu1 }
 0x117   : > { %471 = vst.msk [vmem:[%s974_s23 + $0x10] sm:$0xff] %vm468_vm1, %v446_v33  ;;  %475 = vst.msk [vmem:[%s974_s23 + $0x30] sm:$0xff] %vm468_vm1, %v462_v34 }
 0x118   : > { %v448_v37 = vpop.f32.mrf.mxu0  ;;  %v464_v38 = vpop.f32.mrf.mxu1 }
 0x119   : > { %v449_v39 = vadd.f32 %v625_v18, %v448_v37  ;;  %v465_v40 = vadd.f32 %v625_v18, %v464_v38 }
 0x11a   : > { %v450_v41 = vpop.f32.mrf.mxu0  ;;  %v466_v42 = vpop.f32.mrf.mxu1 }
 0x11b   : > { %472 = vst.msk [vmem:[%s974_s23 + $0x18] sm:$0xff] %vm468_vm1, %v449_v39  ;;  %476 = vst.msk [vmem:[%s974_s23 + $0x38] sm:$0xff] %vm468_vm1, %v465_v40 }
 0x11c PF: > { %s16_s17 = sadd.s32 1, %s826_s17   ;;  %s1017_s12 = smov %s810_s13 }
 0x11d   : > { %p13_p8 = scmp.ge.s32.totalorder %s16_s17, 4   ;;  %s1018_s13 = smov %s814_s14 }
 0x11e   : > { %s1019_s14 = smov %s901_s24  ;;  %s1020_s15 = smov %s822_s16 }
 0x11f   : > { %s1021_s16 = smov %s1023_s19  ;;  %15 = sbr.rel (!%p13_p8) target bundleno = 4 (0x4), region = 78 }
 0x124   :  { %513 = vsyncpa [#allocation3], 1 }
 0x125   :  { %515 = vsyncpa [#allocation3 + $0x1], 1 }

</bundles_post_ra>
